<compile_context>
chip_gen: v5e
topology: v5e:2x2
jax: 0.10.0
libtpu: 0.0.40
codegen_flags: <defaults>
</compile_context>

<pallas_src>
import jax
import jax.numpy as jnp
from jax.experimental import pallas as pl
from jax.experimental.pallas import tpu as pltpu


def _round_up(n, m):
    return ((n + m - 1) // m) * m


def _make_fused_mlp_kernel(num_layers, compute_dtype):
    """kernel(x_ref, w0, b0, w1, b1, ..., o_ref): full tanh-MLP chain.

    bf16 operands feed the MXU, accumulation is f32, bias-add and tanh are f32,
    and the activation is downcast to bf16 only between layers.
    """

    def kernel(*refs):
        x_ref = refs[0]
        o_ref = refs[-1]
        wb = refs[1:-1]                              # w0, b0, w1, b1, ...
        h = x_ref[...].astype(compute_dtype)         # bf16 into the first dot
        for l in range(num_layers):                  # Python-unrolled (static count)
            w = wb[2 * l][...]                       # (Din_p|Dout_p, Dout_p) bf16
            b = wb[2 * l + 1][...]                   # (1, Dout_p) f32
            acc = jnp.dot(h, w, preferred_element_type=jnp.float32) + b
            act = jnp.tanh(acc)                      # f32 tanh (safe on v5e too)
            h = act.astype(compute_dtype) if l < num_layers - 1 else act
        o_ref[...] = h.astype(o_ref.dtype)

    return kernel


def init_auxiliary_network_params(key, input_dim, output_dim, num_layers,
                                  dtype=jnp.float32):
    """Mirror AuxiliaryNetwork.__init__ with PyTorch-default uniform init.

    Returns list of (W, b), W stored as [in, out] (transposed vs torch).
    """
    dims = [(input_dim, output_dim)]
    for _ in range(1, num_layers - 1):
        dims.append((output_dim, output_dim))
    if num_layers > 1:
        dims.append((output_dim, output_dim))

    params = []
    for i, (din, dout) in enumerate(dims):
        kw, kb = jax.random.split(jax.random.fold_in(key, i))
        bound = 1.0 / float(din) ** 0.5
        w = jax.random.uniform(kw, (din, dout), dtype=dtype,
                               minval=-bound, maxval=bound)
        b = jax.random.uniform(kb, (1, dout), dtype=dtype,
                               minval=-bound, maxval=bound)
        params.append((w, b))
    return params


def prepare_auxiliary_network_params(params, *, weight_dtype=jnp.bfloat16):
    """One-time lane-dense (128) zero-padding + bf16 cast of all parameters.

    Hoisted out of the forward so each call only pads x (pure DMA/launch win).
    Biases stay f32 (added after the f32-accumulated dot).
    """
    num_layers = len(params)
    din = params[0][0].shape[0]
    dout = params[-1][0].shape[1]
    din_p = _round_up(din, 128)
    dout_p = _round_up(dout, 128)

    padded = []
    in_dim, in_dim_p = din, din_p
    for (w, b) in params:
        # This module's hidden widths all equal output_dim; a general MLP with
        # varying widths would need per-layer padded dims.
        assert w.shape[0] == in_dim and w.shape[1] == dout
        w_p = jnp.pad(w, ((0, in_dim_p - w.shape[0]), (0, dout_p - w.shape[1])))
        b_p = jnp.pad(jnp.reshape(b, (1, -1)), ((0, 0), (0, dout_p - w.shape[1])))
        padded.append((w_p.astype(weight_dtype), b_p.astype(jnp.float32)))
        in_dim, in_dim_p = dout, dout_p

    return dict(padded=padded, num_layers=num_layers, compute_dtype=weight_dtype,
                din=din, dout=dout, din_p=din_p, dout_p=dout_p)


def _resident_spec(shape):
    """Whole-array spec with constant index_map (VMEM-resident across grid steps)
    and a single pipeline buffer (no pointless double-buffering of weights)."""
    index_map = lambda i: (0, 0)
    if hasattr(pl, "Buffered"):
        try:
            return pl.BlockSpec(shape, index_map, pipeline_mode=pl.Buffered(1))
        except TypeError:  # older jax without pipeline_mode kwarg
            pass
    return pl.BlockSpec(shape, index_map)


def auxiliary_network_forward(x, prepared, *, batch_tile=512):
    """Fused forward of AuxiliaryNetwork: tanh after EVERY layer (incl. last)."""
    B, din = x.shape
    assert din == prepared["din"]
    num_layers = prepared["num_layers"]
    din_p, dout_p, dout = prepared["din_p"], prepared["dout_p"], prepared["dout"]

    # Batch tiling: sublane-aligned tile; force >=2 grid steps when possible so
    # the "parallel" batch axis gives both v7x TensorCores work.
    tb = _round_up(min(batch_tile, _round_up(B, 8)), 8)
    b_pad = _round_up(B, tb)
    n_tiles = b_pad // tb
    while n_tiles < 2 and tb > 8:
        tb = _round_up(max(tb // 2, 8), 8)
        b_pad = _round_up(B, tb)
        n_tiles = b_pad // tb

    # Only the activation is padded per call (params are pre-padded/cast).
    x_p = jnp.pad(x, ((0, b_pad - B), (0, din_p - din)))

    flat_wb = [a for pair in prepared["padded"] for a in pair]

    x_spec = pl.BlockSpec((tb, din_p), lambda i: (i, 0))
    out_spec = pl.BlockSpec((tb, dout_p), lambda i: (i, 0))
    wb_specs = [_resident_spec(a.shape) for a in flat_wb]

    # Explicit VMEM budget: double-buffered x/out tiles + single-buffered
    # weights/biases + slack for in-kernel intermediates.
    act_bytes = 2 * tb * (din_p + dout_p) * x.dtype.itemsize
    wb_bytes = sum(int(a.size) * a.dtype.itemsize for a in flat_wb)
    vmem_limit = int(1.3 * (act_bytes + wb_bytes)) + (4 << 20)
    vmem_limit = min(max(vmem_limit, 16 << 20), 56 << 20)  # below v7x 64 MiB phys

    flops = 2 * b_pad * (din_p * dout_p + max(num_layers - 1, 0) * dout_p * dout_p)
    transcendentals = b_pad * num_layers * dout_p
    bytes_accessed = (x_p.size * x_p.dtype.itemsize + wb_bytes
                      + b_pad * dout_p * x.dtype.itemsize)

    # TODO(synk): for multi-thousand-wide layers, tile K/N inside the kernel
    # instead of holding full weight matrices resident in VMEM.
    out_p = pl.pallas_call(
        _make_fused_mlp_kernel(num_layers, prepared["compute_dtype"]),
        out_shape=jax.ShapeDtypeStruct((b_pad, dout_p), x.dtype),
        grid_spec=pl.GridSpec(
            grid=(n_tiles,),
            in_specs=[x_spec] + wb_specs,
            out_specs=out_spec,
        ),
        compiler_params=pltpu.CompilerParams(
            dimension_semantics=("parallel",),
            vmem_limit_bytes=vmem_limit,
        ),
        cost_estimate=pl.CostEstimate(
            flops=flops,
            transcendentals=transcendentals,
            bytes_accessed=bytes_accessed,
        ),
    )(x_p, *flat_wb)

    return out_p[:B, :dout]


if __name__ == "__main__":
    batch = 8
    input_dim = 16
    output_dim = 32
    num_layers = 3

    key = jax.random.PRNGKey(0)
    kx, kp = jax.random.split(key)
    x = jax.random.normal(kx, (batch, input_dim), dtype=jnp.float32)
    params = init_auxiliary_network_params(kp, input_dim, output_dim, num_layers)
    prepared = prepare_auxiliary_network_params(params)

    out = jax.block_until_ready(auxiliary_network_forward(x, prepared))

    # Pure-JAX f32 reference (tanh after every layer, matching the PyTorch forward).
    ref = x
    for (w, b) in params:
        ref = jnp.tanh(ref @ w + b)

    assert out.shape == (batch, output_dim)
    # bf16 MXU operands => not bit-identical to the f32 reference.
    assert jnp.allclose(out, ref, atol=3e-2, rtol=3e-2)

    # Exercise the multi-tile (and padded-batch-row) path as well.
    x2 = jax.random.normal(jax.random.fold_in(key, 7), (24, input_dim),
                           dtype=jnp.float32)
    out2 = jax.block_until_ready(auxiliary_network_forward(x2, prepared))
    ref2 = x2
    for (w, b) in params:
        ref2 = jnp.tanh(ref2 @ w + b)
    assert out2.shape == (24, output_dim)
    assert jnp.allclose(out2, ref2, atol=3e-2, rtol=3e-2)

    print("KERNEL_OK")
</pallas_src>

<mosaic_0001>
module attributes {stable_mosaic.version = 11 : i64} {
  func.func @kernel(%arg0: i32, %arg1: memref<8x128xf32, #tpu.memory_space<vmem>>, %arg2: memref<128x128xbf16, #tpu.memory_space<vmem>>, %arg3: memref<1x128xf32, #tpu.memory_space<vmem>>, %arg4: memref<128x128xbf16, #tpu.memory_space<vmem>>, %arg5: memref<1x128xf32, #tpu.memory_space<vmem>>, %arg6: memref<128x128xbf16, #tpu.memory_space<vmem>>, %arg7: memref<1x128xf32, #tpu.memory_space<vmem>>, %arg8: memref<8x128xf32, #tpu.memory_space<vmem>>) attributes {dimension_semantics = [#tpu.dimension_semantics<parallel>], iteration_bounds = array<i64: 1>, scalar_prefetch = 0 : i64, scratch_operands = 0 : i64, tpu.core_type = #tpu.core_type<tc>, window_params = [{transform_indices = @transform_0, window_bounds = array<i64: 8, 128>}, {pipeline_mode = #tpu.pipeline_mode<synchronous>, transform_indices = @transform_1, window_bounds = array<i64: 128, 128>}, {pipeline_mode = #tpu.pipeline_mode<synchronous>, transform_indices = @transform_2, window_bounds = array<i64: 1, 128>}, {pipeline_mode = #tpu.pipeline_mode<synchronous>, transform_indices = @transform_3, window_bounds = array<i64: 128, 128>}, {pipeline_mode = #tpu.pipeline_mode<synchronous>, transform_indices = @transform_4, window_bounds = array<i64: 1, 128>}, {pipeline_mode = #tpu.pipeline_mode<synchronous>, transform_indices = @transform_5, window_bounds = array<i64: 128, 128>}, {pipeline_mode = #tpu.pipeline_mode<synchronous>, transform_indices = @transform_6, window_bounds = array<i64: 1, 128>}, {transform_indices = @transform_7, window_bounds = array<i64: 8, 128>}]} {
    %c0 = arith.constant 0 : index
    %c0_0 = arith.constant 0 : index
    %0 = vector.load %arg1[%c0, %c0_0] : memref<8x128xf32, #tpu.memory_space<vmem>>, vector<8x128xf32>
    %1 = arith.truncf %0 : vector<8x128xf32> to vector<8x128xbf16>
    %c0_1 = arith.constant 0 : index
    %c0_2 = arith.constant 0 : index
    %2 = vector.load %arg2[%c0_1, %c0_2] : memref<128x128xbf16, #tpu.memory_space<vmem>>, vector<128x128xbf16>
    %c0_3 = arith.constant 0 : index
    %c0_4 = arith.constant 0 : index
    %3 = vector.load %arg3[%c0_3, %c0_4] : memref<1x128xf32, #tpu.memory_space<vmem>>, vector<1x128xf32>
    %cst = arith.constant dense<0.000000e+00> : vector<8x128xf32>
    %4 = tpu.matmul %1, %2, %cst {dimension_numbers = #tpu.dot_dimension_numbers<[1], [0], [0], [1], [0, 0, 1, 1], [], []>} : vector<8x128xbf16>, vector<128x128xbf16>, vector<8x128xf32> -> vector<8x128xf32>
    %5 = vector.broadcast %3 : vector<1x128xf32> to vector<8x128xf32>
    %6 = arith.addf %4, %5 : vector<8x128xf32>
    %7 = math.tanh %6 : vector<8x128xf32>
    %8 = arith.truncf %7 : vector<8x128xf32> to vector<8x128xbf16>
    %c0_5 = arith.constant 0 : index
    %c0_6 = arith.constant 0 : index
    %9 = vector.load %arg4[%c0_5, %c0_6] : memref<128x128xbf16, #tpu.memory_space<vmem>>, vector<128x128xbf16>
    %c0_7 = arith.constant 0 : index
    %c0_8 = arith.constant 0 : index
    %10 = vector.load %arg5[%c0_7, %c0_8] : memref<1x128xf32, #tpu.memory_space<vmem>>, vector<1x128xf32>
    %cst_9 = arith.constant dense<0.000000e+00> : vector<8x128xf32>
    %11 = tpu.matmul %8, %9, %cst_9 {dimension_numbers = #tpu.dot_dimension_numbers<[1], [0], [0], [1], [0, 0, 1, 1], [], []>} : vector<8x128xbf16>, vector<128x128xbf16>, vector<8x128xf32> -> vector<8x128xf32>
    %12 = vector.broadcast %10 : vector<1x128xf32> to vector<8x128xf32>
    %13 = arith.addf %11, %12 : vector<8x128xf32>
    %14 = math.tanh %13 : vector<8x128xf32>
    %15 = arith.truncf %14 : vector<8x128xf32> to vector<8x128xbf16>
    %c0_10 = arith.constant 0 : index
    %c0_11 = arith.constant 0 : index
    %16 = vector.load %arg6[%c0_10, %c0_11] : memref<128x128xbf16, #tpu.memory_space<vmem>>, vector<128x128xbf16>
    %c0_12 = arith.constant 0 : index
    %c0_13 = arith.constant 0 : index
    %17 = vector.load %arg7[%c0_12, %c0_13] : memref<1x128xf32, #tpu.memory_space<vmem>>, vector<1x128xf32>
    %cst_14 = arith.constant dense<0.000000e+00> : vector<8x128xf32>
    %18 = tpu.matmul %15, %16, %cst_14 {dimension_numbers = #tpu.dot_dimension_numbers<[1], [0], [0], [1], [0, 0, 1, 1], [], []>} : vector<8x128xbf16>, vector<128x128xbf16>, vector<8x128xf32> -> vector<8x128xf32>
    %19 = vector.broadcast %17 : vector<1x128xf32> to vector<8x128xf32>
    %20 = arith.addf %18, %19 : vector<8x128xf32>
    %21 = math.tanh %20 : vector<8x128xf32>
    %c0_15 = arith.constant 0 : index
    %c0_16 = arith.constant 0 : index
    %22 = vector.load %arg8[%c0_15, %c0_16] : memref<8x128xf32, #tpu.memory_space<vmem>>, vector<8x128xf32>
    tpu.vector_store %arg8[%c0_15, %c0_16], %21 {strides = array<i32>} : memref<8x128xf32, #tpu.memory_space<vmem>>, vector<8x128xf32>,
    return
  }
  func.func @transform_0(%arg0: i32) -> (i32, i32) {
    %c0_i32 = arith.constant 0 : i32
    %c0_i32_0 = arith.constant 0 : i32
    return %arg0, %c0_i32 : i32, i32
  }
  func.func @transform_1(%arg0: i32) -> (i32, i32) {
    %c0_i32 = arith.constant 0 : i32
    %c0_i32_0 = arith.constant 0 : i32
    %c0_i32_1 = arith.constant 0 : i32
    return %c0_i32, %c0_i32_0 : i32, i32
  }
  func.func @transform_2(%arg0: i32) -> (i32, i32) {
    %c0_i32 = arith.constant 0 : i32
    %c0_i32_0 = arith.constant 0 : i32
    %c0_i32_1 = arith.constant 0 : i32
    return %c0_i32, %c0_i32_0 : i32, i32
  }
  func.func @transform_3(%arg0: i32) -> (i32, i32) {
    %c0_i32 = arith.constant 0 : i32
    %c0_i32_0 = arith.constant 0 : i32
    %c0_i32_1 = arith.constant 0 : i32
    return %c0_i32, %c0_i32_0 : i32, i32
  }
  func.func @transform_4(%arg0: i32) -> (i32, i32) {
    %c0_i32 = arith.constant 0 : i32
    %c0_i32_0 = arith.constant 0 : i32
    %c0_i32_1 = arith.constant 0 : i32
    return %c0_i32, %c0_i32_0 : i32, i32
  }
  func.func @transform_5(%arg0: i32) -> (i32, i32) {
    %c0_i32 = arith.constant 0 : i32
    %c0_i32_0 = arith.constant 0 : i32
    %c0_i32_1 = arith.constant 0 : i32
    return %c0_i32, %c0_i32_0 : i32, i32
  }
  func.func @transform_6(%arg0: i32) -> (i32, i32) {
    %c0_i32 = arith.constant 0 : i32
    %c0_i32_0 = arith.constant 0 : i32
    %c0_i32_1 = arith.constant 0 : i32
    return %c0_i32, %c0_i32_0 : i32, i32
  }
  func.func @transform_7(%arg0: i32) -> (i32, i32) {
    %c0_i32 = arith.constant 0 : i32
    %c0_i32_0 = arith.constant 0 : i32
    return %arg0, %c0_i32 : i32, i32
  }
}

</mosaic_0001>

<bundles_post_ra>
// kernel: tpu_custom_call.1
= control target key start
LH: loop header
LB: loop body
LE: loop exit
PB: predicated region body
PF: predicated region fallthrough
CT: control target
= control target key end

     0   :  { %12 = vsyncpa [#allocation3], 0  ;;  %s693_s0 = inlined_call_operand.hbm [shape: f32[8,128], index: 0, kind: input, shape index: {}]   ;;  %s694_s1 = inlined_call_operand.hbm [shape: bf16[128,128], index: 1, kind: input, shape index: {}]   ;;  %s695_s2 = inlined_call_operand.vmem [shape: f32[1,128], index: 2, kind: input, shape index: {}]   ;;  %s696_s3 = inlined_call_operand.hbm [shape: bf16[128,128], index: 3, kind: input, shape index: {}]   ;;  %s697_s4 = inlined_call_operand.vmem [shape: f32[1,128], index: 4, kind: input, shape index: {}]   ;;  %s698_s5 = inlined_call_operand.hbm [shape: bf16[128,128], index: 5, kind: input, shape index: {}]   ;;  %s699_s6 = inlined_call_operand.vmem [shape: f32[1,128], index: 6, kind: input, shape index: {}]   ;;  %s700_s7 = inlined_call_operand.hbm [shape: f32[8,128], index: 7, kind: output, shape index: {}]  }
   0x1   :  { %13 = vsyncpa [#allocation6], 0 }
   0x2   :  { %14 = vsyncpa [#allocation9], 0  ;;  %s31_s26 = sshll.u32 %s694_s1, 4  ;;  %s32_s26 = int_to_ptr.hbm [resolvable:$true] %s31_s26 }
   0x3   :  { %15 = vsyncpa [#allocation4], 0  ;;  %s622_s27 = smov [#allocation5]   ;;  %s21_s8 = sshll.u32 %s693_s0, 4  ;;  %s22_s8 = int_to_ptr.hbm [resolvable:$true] %s21_s8 }
   0x4   :  { %s33_s28 = sshll.u32 %s622_s27, 4  ;;  %s623_s9 = smov 64   ;;  %s34_s28 = int_to_ptr.vmem [resolvable:$true] %s33_s28 }
   0x5   :  { %s624_s10 = smov 4   ;;  %s625_s11 = smov [#allocation2]  }
   0x6   :  { %39 = dma.hbm_to_vmem [thread:$0]  %s32_s26, 1024, %s34_s28, [#allocation6], %s623_s9, %s623_s9, %s624_s10  }
   0x7   :  { %s23_s12 = sshll.u32 %s625_s11, 4  ;;  %s46_s15 = sshll.u32 %s696_s3, 4  ;;  %s24_s12 = int_to_ptr.vmem [resolvable:$true] %s23_s12  ;;  %s47_s15 = int_to_ptr.hbm [resolvable:$true] %s46_s15 }
   0x8   :  { %26 = dma.hbm_to_vmem [thread:$0]  %s22_s8, 128, %s24_s12, [#allocation3]  }
   0x9   :  { %s61_s17 = sshll.u32 %s698_s5, 4  ;;  %s626_s18 = smov [#allocation7]   ;;  %s62_s17 = int_to_ptr.hbm [resolvable:$true] %s61_s17 }
   0xa   :  { %s48_s19 = sshll.u32 %s626_s18, 4  ;;  %s627_s0 = smov [#allocation8]   ;;  %s49_s19 = int_to_ptr.vmem [resolvable:$true] %s48_s19 }
   0xb   :  { %54 = dma.hbm_to_vmem [thread:$0]  %s47_s15, 1024, %s49_s19, [#allocation6], %s623_s9, %s623_s9, %s624_s10  }
   0xc   :  { %s63_s20 = sshll.u32 %s627_s0, 4  ;;  %s64_s20 = int_to_ptr.vmem [resolvable:$true] %s63_s20 }
   0xd   :  { %69 = dma.hbm_to_vmem [thread:$0]  %s62_s17, 1024, %s64_s20, [#allocation9], %s623_s9, %s623_s9, %s624_s10  }
   0xe   :  { %614 = dma.done.wait [#allocation3], 128  }
   0xf   :  { %615 = vsyncadd [#allocation3], 4294967168 }
  0x10   :  { %616 = dma.done.wait [#allocation6], 2048  }
  0x11   :  { %617 = vsyncadd [#allocation6], 4294965248 }
  0x12   :  { %618 = dma.done.wait [#allocation9], 1024  }
  0x13   :  { %619 = vsyncadd [#allocation9], 4294966272  ;;  %v461_v0 = vld [vmem:[#allocation5 + $0x38] sm:$0xff]  ;;  %v460_v1 = vld [vmem:[#allocation5 + $0x30] sm:$0xff]  ;;  %s628_s24 = smov [#allocation10]  }
  0x14   :  { %158 = vmatpush.bf16.msra.mxu0 %v461_v0  ;;  %v469_v2 = vld [vmem:[#allocation7 + $0x38] sm:$0xff]  ;;  %v468_v3 = vld [vmem:[#allocation7 + $0x30] sm:$0xff]  ;;  %v459_v4 = vld [vmem:[#allocation5 + $0x28] sm:$0xff]  ;;  %s344_s25 = sshll.u32 %s628_s24, 4  ;;  %s345_s25 = int_to_ptr.vmem [resolvable:$true] %s344_s25 }
  0x15   :  { %241 = vmatpush.bf16.msra.mxu1 %v469_v2  ;;  %v467_v5 = vld [vmem:[#allocation7 + $0x28] sm:$0xff]  ;;  %v458_v6 = vld [vmem:[#allocation5 + $0x20] sm:$0xff]  ;;  %v457_v8 = vld [vmem:[#allocation5 + $0x18] sm:$0xff] }
  0x16   :  { %v466_v7 = vld [vmem:[#allocation7 + $0x20] sm:$0xff]  ;;  %v465_v9 = vld [vmem:[#allocation7 + $0x18] sm:$0xff]  ;;  %v456_v10 = vld [vmem:[#allocation5 + $0x10] sm:$0xff] }
  0x17   :  { %v455_v11 = vld [vmem:[#allocation5 + $0x8] sm:$0xff]  ;;  %v454_v12 = vld [vmem:[#allocation5] sm:$0xff]  ;;  %v88_v13 = vld [vmem:[#allocation2] sm:$0xff] }
  0x18   :  { %159 = vmatpush.bf16.msra.mxu0 %v460_v1  ;;  %v89_v14 = vpack.c.bf16 %v88_v13, %v88_v13  ;;  %v464_v15 = vld [vmem:[#allocation7 + $0x10] sm:$0xff]  ;;  %v463_v16 = vld [vmem:[#allocation7 + $0x8] sm:$0xff]  ;;  %v462_v17 = vld [vmem:[#allocation7] sm:$0xff] }
  0x19   :  { %242 = vmatpush.bf16.msra.mxu1 %v468_v3  ;;  %v477_v18 = vld [vmem:[#allocation8 + $0x38] sm:$0xff]  ;;  %v476_v19 = vld [vmem:[#allocation8 + $0x30] sm:$0xff]  ;;  %v475_v20 = vld [vmem:[#allocation8 + $0x28] sm:$0xff] }
  0x1a   :  { %324 = vmatpush.bf16.msra.mxu2 %v477_v18  ;;  %v474_v21 = vld [vmem:[#allocation8 + $0x20] sm:$0xff]  ;;  %v473_v22 = vld [vmem:[#allocation8 + $0x18] sm:$0xff]  ;;  %v472_v29 = vld [vmem:[#allocation8 + $0x10] sm:$0xff] }
  0x1b   :  { %v485_v23 = vld [vmem:[%s695_s2] ss:$0 sm:$0xff]  ;;  %v471_v30 = vld [vmem:[#allocation8 + $0x8] sm:$0xff]  ;;  %v470_v31 = vld [vmem:[#allocation8] sm:$0xff] }
  0x1c   :  { %160 = vmatpush.bf16.msra.mxu0 %v459_v4  ;;  %v486_v32 = vld [vmem:[%s697_s4] ss:$0 sm:$0xff]  ;;  %s346_s4 = sshll.u32 %s700_s7, 4  ;;  %s347_s4 = int_to_ptr.hbm [resolvable:$true] %s346_s4 }
  0x1d   :  { %243 = vmatpush.bf16.msra.mxu1 %v467_v5  ;;  %v487_v38 = vld [vmem:[%s699_s6] ss:$0 sm:$0xff] }
  0x1e   :  { %325 = vmatpush.bf16.msra.mxu2 %v476_v19 }
  0x20   :  { %161 = vmatpush.bf16.msra.mxu0 %v458_v6 }
  0x21   :  { %244 = vmatpush.bf16.msra.mxu1 %v466_v7 }
  0x22   :  { %326 = vmatpush.bf16.msra.mxu2 %v475_v20 }
  0x24   :  { %162 = vmatpush.bf16.msra.mxu0 %v457_v8 }
  0x25   :  { %245 = vmatpush.bf16.msra.mxu1 %v465_v9 }
  0x26   :  { %327 = vmatpush.bf16.msra.mxu2 %v474_v21 }
  0x28   :  { %163 = vmatpush.bf16.msra.mxu0 %v456_v10 }
  0x29   :  { %246 = vmatpush.bf16.msra.mxu1 %v464_v15 }
  0x2a   :  { %328 = vmatpush.bf16.msra.mxu2 %v473_v22 }
  0x2c   :  { %164 = vmatpush.bf16.msra.mxu0 %v455_v11 }
  0x2d   :  { %247 = vmatpush.bf16.msra.mxu1 %v463_v16 }
  0x2e   :  { %329 = vmatpush.bf16.msra.mxu2 %v472_v29 }
  0x30   :  { %165 = vmatpush.bf16.msra.mxu0 %v454_v12 }
  0x31   :  { %248 = vmatpush.bf16.msra.mxu1 %v462_v17 }
  0x32   :  { %330 = vmatpush.bf16.msra.mxu2 %v471_v30 }
  0x33   :  { %166 = vmatmul.bf16.vlgmr.msra.gmra.mxu0 %v89_v14 }
  0x36   :  { %331 = vmatpush.bf16.msra.mxu2 %v470_v31 }
  0xb0   :  { %v167_v24 = vpop.f32.mrf.mxu0 }
  0xb1   :  { %v168_v25 = vadd.f32 %v485_v23, %v167_v24 }
  0xb3   :  { %488 = vtanh.f32 %v168_v25 }
  0xb8   :  { %v169_v26 = vpop.f32.mrf.mxu0 }
  0xb9   :  { %v489_v27 = vpop.eup %488 }
  0xba   :  { %v172_v28 = vpack.c.bf16 %v489_v27, %v489_v27 }
  0xbc   :  { %249 = vmatmul.bf16.vlgmr.msra.gmra.mxu1 %v172_v28 }
 0x139   :  { %v250_v33 = vpop.f32.mrf.mxu1 }
 0x13a   :  { %v251_v34 = vadd.f32 %v486_v32, %v250_v33 }
 0x13c   :  { %490 = vtanh.f32 %v251_v34 }
 0x141   :  { %v252_v35 = vpop.f32.mrf.mxu1 }
 0x142   :  { %v491_v36 = vpop.eup %490 }
 0x143   :  { %v255_v37 = vpack.c.bf16 %v491_v36, %v491_v36 }
 0x145   :  { %332 = vmatmul.bf16.vlgmr.msra.gmra.mxu2 %v255_v37 }
 0x1c8   :  { %v333_v39 = vpop.f32.mrf.mxu2 }
 0x1c9   :  { %v334_v40 = vadd.f32 %v487_v38, %v333_v39 }
 0x1cb   :  { %492 = vtanh.f32 %v334_v40 }
 0x1d0   :  { %v335_v41 = vpop.f32.mrf.mxu2 }
 0x1d1   :  { %v493_v42 = vpop.eup %492 }
 0x1d2   :  { %338 = vst [vmem:[#allocation10] sm:$0xff] %v493_v42 }
 0x1d3   :  { %349 = dma.vmem_to_hbm [thread:$0]  %s345_s25, 128, %s347_s4, [#allocation4]  }
 0x1d4   :  { %620 = dma.done.wait [#allocation4], 128  }
 0x1d5   :  { %621 = vsyncadd [#allocation4], 4294967168 }
 0x1d6   :  { %354 = vsyncpa [#allocation3], 1 }
 0x1d7   :  { %355 = vsyncpa [#allocation6], 1 }
 0x1d8   :  { %356 = vsyncpa [#allocation9], 1 }
 0x1d9   :  { %357 = vsyncpa [#allocation4], 1 }

</bundles_post_ra>
